<compile_context>
chip_gen: v7x
topology: tpu7x:2x2x1
jax: 0.10.0
libtpu: 0.0.40
codegen_flags: <defaults>
</compile_context>

<pallas_src>
import functools

import jax
import jax.numpy as jnp
from jax import lax
from jax.experimental import pallas as pl
from jax.experimental.pallas import tpu as pltpu

LN_EPS = 1e-5  # torch.nn.LayerNorm default


def _round_up(x, m):
    return (x + m - 1) // m * m


def _cdiv(a, b):
    return (a + b - 1) // b


def _tpu_hw_info():
    """Return (vmem_capacity_bytes, tensorcores_per_chip) with safe fallbacks."""
    vmem = 64 * 1024 * 1024   # conservative default (v7x-sized)
    cores = 1                 # conservative: skip megacore split if unknown
    try:
        info = pltpu.get_tpu_info()
        vmem = int(getattr(info, "vmem_capacity_bytes", vmem) or vmem)
        for name in ("num_tensorcores", "tensorcore_count", "num_cores",
                     "cores_per_chip"):
            c = getattr(info, name, None)
            if c:
                cores = int(c)
                break
    except Exception:
        pass
    return vmem, cores


def _layernorm_rows(y, g, b, d_real, d_padded):
    """Per-row LayerNorm over the first `d_real` columns of y (f32).

    Padded columns of y are exactly zero (x @ zero-padded W columns), so the
    row sum over the full width equals the real-width sum; the centered
    sum-of-squares gets a closed-form correction for the padded columns.
    Padded gamma/beta are zero, so padded output columns come out as zero.
    """
    inv_d = jnp.float32(1.0 / d_real)
    mean = jnp.sum(y, axis=-1, keepdims=True) * inv_d
    yc = y - mean
    ss = jnp.sum(yc * yc, axis=-1, keepdims=True)
    if d_padded > d_real:  # static
        ss = ss - jnp.float32(d_padded - d_real) * (mean * mean)
    var = jnp.maximum(ss * inv_d, 0.0)
    inv_std = lax.rsqrt(var + LN_EPS)  # EUP slot
    return yc * inv_std * g + b


def _fused_kernel(x_ref, w_ref, g_ref, b_ref, o_ref, *, d_out_real, d_out_pad):
    """Single K step: y = x @ W (full reduction) then LayerNorm."""
    y = jnp.dot(x_ref[...], w_ref[...], preferred_element_type=jnp.float32)
    g = g_ref[...].astype(jnp.float32)
    b = b_ref[...].astype(jnp.float32)
    o_ref[...] = _layernorm_rows(y, g, b, d_out_real, d_out_pad).astype(o_ref.dtype)


def _ktiled_kernel(x_ref, w_ref, g_ref, b_ref, o_ref, acc_ref, *,
                   d_out_real, d_out_pad):
    """K-tiled: accumulate x @ W chunks into f32 scratch, LN at the last step."""
    k = pl.program_id(1)

    @pl.when(k == 0)
    def _init():
        acc_ref[...] = jnp.zeros_like(acc_ref)

    acc_ref[...] += jnp.dot(x_ref[...], w_ref[...],
                            preferred_element_type=jnp.float32)

    @pl.when(k == pl.num_programs(1) - 1)
    def _finalize():
        g = g_ref[...].astype(jnp.float32)
        b = b_ref[...].astype(jnp.float32)
        o_ref[...] = _layernorm_rows(acc_ref[...], g, b,
                                     d_out_real, d_out_pad).astype(o_ref.dtype)


def prepare_audio_proj_params(proj_weight, ln_gamma, ln_beta):
    """One-time parameter prep (hoist out of the per-call path).

    proj_weight : [D_out, D_in]  (PyTorch nn.Linear weight layout)
    ln_gamma    : [D_out]
    ln_beta     : [D_out]
    Returns (w_p [D_in_p, D_out_p], g_p [1, D_out_p], b_p [1, D_out_p], d_in, d_out)
    with feature dims padded up to multiples of 128 (zeros).
    """
    d_out, d_in = proj_weight.shape
    d_in_p = _round_up(d_in, 128)
    d_out_p = _round_up(d_out, 128)

    w_p = proj_weight.T
    if (d_in_p, d_out_p) != (d_in, d_out):
        w_p = jnp.pad(w_p, ((0, d_in_p - d_in), (0, d_out_p - d_out)))

    g_p = ln_gamma.reshape(1, d_out)
    b_p = ln_beta.reshape(1, d_out)
    if d_out_p != d_out:
        g_p = jnp.pad(g_p, ((0, 0), (0, d_out_p - d_out)))
        b_p = jnp.pad(b_p, ((0, 0), (0, d_out_p - d_out)))

    return (w_p, g_p, b_p, d_in, d_out)


def _choose_nk(d_in_p, d_out_p, w_itemsize, weight_budget):
    """Smallest K split (nk | d_in_p/128) whose weight block fits the budget."""
    n128 = max(1, d_in_p // 128)
    for nk in range(1, n128 + 1):
        if n128 % nk:
            continue
        tk = d_in_p // nk
        bufs = 1 if nk == 1 else 2  # invariant -> single buffer; k-varying -> double
        if bufs * tk * d_out_p * w_itemsize <= weight_budget:
            return nk, tk
    return n128, 128


def audio_proj_apply(audio_embeds, prepared, *, tm=None, vmem_budget_bytes=None,
                     _force_nk=None):
    """Apply the fused Linear(no-bias)+LayerNorm with pre-prepared parameters.

    audio_embeds : [B, S, D_in] (f32 or bf16; output follows this dtype)
    prepared     : result of prepare_audio_proj_params(...)
    returns      : [B, S, D_out]
    """
    w_p, g_p, b_p, d_in, d_out = prepared
    B, S, d_in_x = audio_embeds.shape
    assert d_in_x == d_in, "audio_embeds feature dim mismatch"
    M = B * S
    d_in_p, d_out_p = w_p.shape

    # Row-major slab; feature pad only if D_in is not lane-aligned.
    x2d = audio_embeds.reshape(M, d_in)
    if d_in_p != d_in:
        # TODO(synk): mask the padded input lanes in-kernel (iota compare)
        # instead of this extra XLA pad pass for ragged D_in.
        x2d = jnp.pad(x2d, ((0, 0), (0, d_in_p - d_in)))

    # Generation-aware VMEM budget (== vmem_limit_bytes).
    vmem_cap, n_cores = _tpu_hw_info()
    if vmem_budget_bytes is None:
        vmem_budget_bytes = min(int(0.75 * vmem_cap), 100 * 1024 * 1024)
    budget = int(vmem_budget_bytes)

    x_itemsize = jnp.dtype(x2d.dtype).itemsize
    w_itemsize = jnp.dtype(w_p.dtype).itemsize
    out_dtype = audio_embeds.dtype
    o_itemsize = jnp.dtype(out_dtype).itemsize

    # K split: only if the resident weight would eat more than ~half of VMEM.
    if _force_nk is not None:
        nk = int(_force_nk)
        tk = d_in_p // nk
        assert tk * nk == d_in_p and tk % 128 == 0, "_force_nk must divide D_in_p/128"
    else:
        nk, tk = _choose_nk(d_in_p, d_out_p, w_itemsize, budget // 2)

    # Row tile: big by default, multiple of 8, clamped to the row count.
    if tm is None:
        tm = 1024 if budget >= 80 * 1024 * 1024 else 512
    tm_eff = min(int(tm), _round_up(M, 8))
    tm_eff = max(8, _round_up(tm_eff, 8))

    # Give every TensorCore work only where a second core exists (v7x);
    # on single-TC chips splitting a small M just adds grid-step overhead.
    if n_cores >= 2:
        target = 2 * n_cores
        if _cdiv(M, tm_eff) < target and M >= 128 * target:
            tm_eff = max(8, _round_up(_cdiv(M, target), 8))

    # Shrink the row tile until the working set fits the budget.
    def _vmem_estimate(t):
        w_bufs = 1 if nk == 1 else 2
        est = (2 * t * tk * x_itemsize            # x tiles (double-buffered)
               + 2 * t * d_out_p * o_itemsize     # out tiles (double-buffered)
               + w_bufs * tk * d_out_p * w_itemsize
               + 4 * d_out_p * 4)                 # gamma / beta
        if nk > 1:
            est += t * d_out_p * 4                # f32 accumulator scratch
        return est

    while tm_eff > 8 and _vmem_estimate(tm_eff) > budget:
        tm_eff = max(8, _round_up(tm_eff // 2, 8))

    n_rows = _cdiv(M, tm_eff)

    cost = pl.CostEstimate(
        flops=2 * M * d_in_p * d_out_p,
        transcendentals=M,
        bytes_accessed=int(x2d.size * x_itemsize
                           + w_p.size * w_itemsize
                           + g_p.size * jnp.dtype(g_p.dtype).itemsize
                           + b_p.size * jnp.dtype(b_p.dtype).itemsize
                           + M * d_out_p * o_itemsize),
    )
    out_shape = jax.ShapeDtypeStruct((M, d_out_p), out_dtype)

    def _build(single_buffer_invariants):
        def inv_spec(shape, imap):
            if single_buffer_invariants:
                return pl.BlockSpec(shape, imap, pipeline_mode=pl.Buffered(1))
            return pl.BlockSpec(shape, imap)

        if nk == 1:
            kernel = functools.partial(_fused_kernel,
                                       d_out_real=d_out, d_out_pad=d_out_p)
            grid = (n_rows,)
            in_specs = [
                pl.BlockSpec((tm_eff, d_in_p), lambda i: (i, 0)),
                inv_spec((d_in_p, d_out_p), lambda i: (0, 0)),
                inv_spec((1, d_out_p), lambda i: (0, 0)),
                inv_spec((1, d_out_p), lambda i: (0, 0)),
            ]
            out_specs = pl.BlockSpec((tm_eff, d_out_p), lambda i: (i, 0))
            scratch = ()
            sem = ("parallel",)
        else:
            kernel = functools.partial(_ktiled_kernel,
                                       d_out_real=d_out, d_out_pad=d_out_p)
            grid = (n_rows, nk)
            in_specs = [
                pl.BlockSpec((tm_eff, tk), lambda i, k: (i, k)),
                pl.BlockSpec((tk, d_out_p), lambda i, k: (k, 0)),
                inv_spec((1, d_out_p), lambda i, k: (0, 0)),
                inv_spec((1, d_out_p), lambda i, k: (0, 0)),
            ]
            out_specs = pl.BlockSpec((tm_eff, d_out_p), lambda i, k: (i, 0))
            scratch = (pltpu.VMEM((tm_eff, d_out_p), jnp.float32),)
            sem = ("parallel", "arbitrary")

        return pl.pallas_call(
            kernel,
            out_shape=out_shape,
            grid_spec=pltpu.PrefetchScalarGridSpec(
                num_scalar_prefetch=0,
                grid=grid,
                in_specs=in_specs,
                out_specs=out_specs,
                scratch_shapes=scratch),
            compiler_params=pltpu.CompilerParams(
                dimension_semantics=sem,
                vmem_limit_bytes=budget),
            cost_estimate=cost,
        )

    try:
        out2d = _build(True)(x2d, w_p, g_p, b_p)
    except Exception:
        # Fallback: identical kernel without pipeline_mode=Buffered(1) in case
        # the running JAX build rejects single-buffered invariant specs.
        out2d = _build(False)(x2d, w_p, g_p, b_p)

    if d_out_p != d_out:
        out2d = out2d[:, :d_out]
    return out2d.reshape(B, S, d_out)


def audio_proj_model(audio_embeds, proj_weight, ln_gamma, ln_beta, *,
                     cast_to_bf16=False, **kwargs):
    """Convenience wrapper matching AudioProjModel.forward.

    For repeated calls, prefer prepare_audio_proj_params(...) once and
    audio_proj_apply(...) per call (avoids re-running the weight prep pass).
    cast_to_bf16=True is the fast path on all TPU generations (halves x/W HBM
    bytes, f32 accumulation and LN math kept); off by default to preserve the
    module's f32 semantics.
    """
    if cast_to_bf16 and audio_embeds.dtype == jnp.float32:
        audio_embeds = audio_embeds.astype(jnp.bfloat16)
        proj_weight = proj_weight.astype(jnp.bfloat16)
    prepared = prepare_audio_proj_params(proj_weight, ln_gamma, ln_beta)
    return audio_proj_apply(audio_embeds, prepared, **kwargs)


def _reference(audio_embeds, proj_weight, ln_gamma, ln_beta):
    x = audio_embeds.astype(jnp.float32)
    w = proj_weight.astype(jnp.float32)
    y = jnp.einsum("bsd,od->bso", x, w)
    mean = jnp.mean(y, axis=-1, keepdims=True)
    var = jnp.mean((y - mean) ** 2, axis=-1, keepdims=True)
    y_hat = (y - mean) * lax.rsqrt(var + LN_EPS)
    return y_hat * ln_gamma.astype(jnp.float32) + ln_beta.astype(jnp.float32)


if __name__ == "__main__":
    # Small shapes consistent with the module (lane-dense hidden=128).
    B, S = 2, 8
    audio_in_dim = 128
    cross_attention_dim = 128

    key = jax.random.PRNGKey(0)
    k_x, k_w, k_g, k_b = jax.random.split(key, 4)

    audio_embeds = jax.random.normal(k_x, (B, S, audio_in_dim), jnp.float32)
    proj_weight = jax.random.normal(
        k_w, (cross_attention_dim, audio_in_dim), jnp.float32
    ) * (1.0 / jnp.sqrt(audio_in_dim))
    ln_gamma = 1.0 + 0.1 * jax.random.normal(k_g, (cross_attention_dim,), jnp.float32)
    ln_beta = 0.1 * jax.random.normal(k_b, (cross_attention_dim,), jnp.float32)

    # f32 path, weight prepared once (the recommended repeated-call pattern).
    prepared = prepare_audio_proj_params(proj_weight, ln_gamma, ln_beta)
    out = jax.block_until_ready(audio_proj_apply(audio_embeds, prepared))
    ref = _reference(audio_embeds, proj_weight, ln_gamma, ln_beta)
    assert out.shape == (B, S, cross_attention_dim)
    assert jnp.allclose(out, ref, atol=1e-4, rtol=1e-4), "f32 mismatch vs reference"

    # bf16 inputs: native bf16 on the MXU with f32 accumulation / LN stats.
    x_bf = audio_embeds.astype(jnp.bfloat16)
    w_bf = proj_weight.astype(jnp.bfloat16)
    out_bf = jax.block_until_ready(audio_proj_model(x_bf, w_bf, ln_gamma, ln_beta))
    ref_bf = _reference(x_bf, w_bf, ln_gamma, ln_beta)
    assert out_bf.dtype == jnp.bfloat16
    assert jnp.allclose(out_bf.astype(jnp.float32), ref_bf, atol=5e-2, rtol=5e-2), \
        "bf16 mismatch vs reference"

    # Optional bf16 fast path on f32 inputs.
    out_fast = jax.block_until_ready(
        audio_proj_model(audio_embeds, proj_weight, ln_gamma, ln_beta,
                         cast_to_bf16=True))
    assert jnp.allclose(out_fast.astype(jnp.float32), ref, atol=5e-2, rtol=5e-2), \
        "bf16 fast-path mismatch vs reference"

    # Ragged shapes: M not a multiple of 8 (in-kernel edge handling) and
    # d_in / d_out not multiples of 128 (zero-padded features).
    B2, S2, din2, dout2 = 1, 10, 80, 96
    k1, k2, k3, k4 = jax.random.split(jax.random.PRNGKey(1), 4)
    x2 = jax.random.normal(k1, (B2, S2, din2), jnp.float32)
    w2 = jax.random.normal(k2, (dout2, din2), jnp.float32) * (1.0 / jnp.sqrt(din2))
    g2 = 1.0 + 0.1 * jax.random.normal(k3, (dout2,), jnp.float32)
    b2 = 0.1 * jax.random.normal(k4, (dout2,), jnp.float32)
    out2 = jax.block_until_ready(audio_proj_model(x2, w2, g2, b2))
    ref2 = _reference(x2, w2, g2, b2)
    assert out2.shape == (B2, S2, dout2)
    assert jnp.allclose(out2, ref2, atol=1e-4, rtol=1e-4), "padded-shape mismatch"

    # K-tiled path (forced small split) to exercise the accumulator kernel
    # used when the weight would not fit ~half of VMEM (e.g. big D on v7x).
    din3, dout3 = 256, 128
    k5, k6 = jax.random.split(jax.random.PRNGKey(2), 2)
    x3 = jax.random.normal(k5, (B, S, din3), jnp.float32)
    w3 = jax.random.normal(k6, (dout3, din3), jnp.float32) * (1.0 / jnp.sqrt(din3))
    prepared3 = prepare_audio_proj_params(w3, ln_gamma, ln_beta)
    out3 = jax.block_until_ready(audio_proj_apply(x3, prepared3, _force_nk=2))
    ref3 = _reference(x3, w3, ln_gamma, ln_beta)
    assert out3.shape == (B, S, dout3)
    assert jnp.allclose(out3, ref3, atol=1e-4, rtol=1e-4), "k-tiled mismatch"

    print("KERNEL_OK")
</pallas_src>

<mosaic_0001>
module attributes {stable_mosaic.version = 11 : i64} {
  func.func @_fused_kernel(%arg0: i32, %arg1: memref<16x128xf32, #tpu.memory_space<vmem>>, %arg2: memref<128x128xf32, #tpu.memory_space<vmem>>, %arg3: memref<1x128xf32, #tpu.memory_space<vmem>>, %arg4: memref<1x128xf32, #tpu.memory_space<vmem>>, %arg5: memref<16x128xf32, #tpu.memory_space<vmem>>) attributes {dimension_semantics = [#tpu.dimension_semantics<parallel>], iteration_bounds = array<i64: 1>, scalar_prefetch = 0 : i64, scratch_operands = 0 : i64, tpu.core_type = #tpu.core_type<tc>, window_params = [{transform_indices = @transform_0, window_bounds = array<i64: 16, 128>}, {pipeline_mode = #tpu.pipeline_mode<synchronous>, transform_indices = @transform_1, window_bounds = array<i64: 128, 128>}, {pipeline_mode = #tpu.pipeline_mode<synchronous>, transform_indices = @transform_2, window_bounds = array<i64: 1, 128>}, {pipeline_mode = #tpu.pipeline_mode<synchronous>, transform_indices = @transform_3, window_bounds = array<i64: 1, 128>}, {transform_indices = @transform_4, window_bounds = array<i64: 16, 128>}]} {
    %c0 = arith.constant 0 : index
    %c0_0 = arith.constant 0 : index
    %0 = vector.load %arg1[%c0, %c0_0] : memref<16x128xf32, #tpu.memory_space<vmem>>, vector<16x128xf32>
    %c0_1 = arith.constant 0 : index
    %c0_2 = arith.constant 0 : index
    %1 = vector.load %arg2[%c0_1, %c0_2] : memref<128x128xf32, #tpu.memory_space<vmem>>, vector<128x128xf32>
    %cst = arith.constant dense<0.000000e+00> : vector<16x128xf32>
    %2 = tpu.matmul %0, %1, %cst {dimension_numbers = #tpu.dot_dimension_numbers<[1], [0], [0], [1], [0, 0, 1, 1], [], []>} : vector<16x128xf32>, vector<128x128xf32>, vector<16x128xf32> -> vector<16x128xf32>
    %c0_3 = arith.constant 0 : index
    %c0_4 = arith.constant 0 : index
    %3 = vector.load %arg3[%c0_3, %c0_4] : memref<1x128xf32, #tpu.memory_space<vmem>>, vector<1x128xf32>
    %c0_5 = arith.constant 0 : index
    %c0_6 = arith.constant 0 : index
    %4 = vector.load %arg4[%c0_5, %c0_6] : memref<1x128xf32, #tpu.memory_space<vmem>>, vector<1x128xf32>
    %cst_7 = arith.constant dense<0.000000e+00> : vector<16xf32>
    %5 = vector.multi_reduction <add>, %2, %cst_7 [1] : vector<16x128xf32> to vector<16xf32>
    %6 = vector.shape_cast %5 : vector<16xf32> to vector<16x1xf32>
    %cst_8 = arith.constant 7.812500e-03 : f32
    %7 = vector.broadcast %cst_8 : f32 to vector<16x1xf32>
    %8 = arith.mulf %6, %7 : vector<16x1xf32>
    %9 = vector.broadcast %8 : vector<16x1xf32> to vector<16x128xf32>
    %10 = arith.subf %2, %9 : vector<16x128xf32>
    %11 = arith.mulf %10, %10 : vector<16x128xf32>
    %cst_9 = arith.constant dense<0.000000e+00> : vector<16xf32>
    %12 = vector.multi_reduction <add>, %11, %cst_9 [1] : vector<16x128xf32> to vector<16xf32>
    %13 = vector.shape_cast %12 : vector<16xf32> to vector<16x1xf32>
    %cst_10 = arith.constant 7.812500e-03 : f32
    %14 = vector.broadcast %cst_10 : f32 to vector<16x1xf32>
    %15 = arith.mulf %13, %14 : vector<16x1xf32>
    %cst_11 = arith.constant 0.000000e+00 : f32
    %16 = vector.broadcast %cst_11 : f32 to vector<16x1xf32>
    %17 = arith.maximumf %15, %16 : vector<16x1xf32>
    %cst_12 = arith.constant 9.99999974E-6 : f32
    %18 = vector.broadcast %cst_12 : f32 to vector<16x1xf32>
    %19 = arith.addf %17, %18 : vector<16x1xf32>
    %20 = math.rsqrt %19 : vector<16x1xf32>
    %21 = vector.broadcast %20 : vector<16x1xf32> to vector<16x128xf32>
    %22 = arith.mulf %10, %21 : vector<16x128xf32>
    %23 = vector.broadcast %3 : vector<1x128xf32> to vector<16x128xf32>
    %24 = arith.mulf %22, %23 : vector<16x128xf32>
    %25 = vector.broadcast %4 : vector<1x128xf32> to vector<16x128xf32>
    %26 = arith.addf %24, %25 : vector<16x128xf32>
    %c0_13 = arith.constant 0 : index
    %c0_14 = arith.constant 0 : index
    %27 = vector.load %arg5[%c0_13, %c0_14] : memref<16x128xf32, #tpu.memory_space<vmem>>, vector<16x128xf32>
    tpu.vector_store %arg5[%c0_13, %c0_14], %26 {strides = array<i32>} : memref<16x128xf32, #tpu.memory_space<vmem>>, vector<16x128xf32>,
    return
  }
  func.func @transform_0(%arg0: i32) -> (i32, i32) {
    %c0_i32 = arith.constant 0 : i32
    %c0_i32_0 = arith.constant 0 : i32
    return %arg0, %c0_i32 : i32, i32
  }
  func.func @transform_1(%arg0: i32) -> (i32, i32) {
    %c0_i32 = arith.constant 0 : i32
    %c0_i32_0 = arith.constant 0 : i32
    %c0_i32_1 = arith.constant 0 : i32
    return %c0_i32, %c0_i32_0 : i32, i32
  }
  func.func @transform_2(%arg0: i32) -> (i32, i32) {
    %c0_i32 = arith.constant 0 : i32
    %c0_i32_0 = arith.constant 0 : i32
    %c0_i32_1 = arith.constant 0 : i32
    return %c0_i32, %c0_i32_0 : i32, i32
  }
  func.func @transform_3(%arg0: i32) -> (i32, i32) {
    %c0_i32 = arith.constant 0 : i32
    %c0_i32_0 = arith.constant 0 : i32
    %c0_i32_1 = arith.constant 0 : i32
    return %c0_i32, %c0_i32_0 : i32, i32
  }
  func.func @transform_4(%arg0: i32) -> (i32, i32) {
    %c0_i32 = arith.constant 0 : i32
    %c0_i32_0 = arith.constant 0 : i32
    return %arg0, %c0_i32 : i32, i32
  }
}

module attributes {stable_mosaic.version = 11 : i64} {
  func.func @_fused_kernel(%arg0: i32, %arg1: memref<16x128xf32, #tpu.memory_space<vmem>>, %arg2: memref<128x128xf32, #tpu.memory_space<vmem>>, %arg3: memref<1x128xf32, #tpu.memory_space<vmem>>, %arg4: memref<1x128xf32, #tpu.memory_space<vmem>>, %arg5: memref<16x128xf32, #tpu.memory_space<vmem>>) attributes {dimension_semantics = [#tpu.dimension_semantics<parallel>], iteration_bounds = array<i64: 1>, scalar_prefetch = 0 : i64, scratch_operands = 0 : i64, tpu.core_type = #tpu.core_type<tc>, window_params = [{transform_indices = @transform_0, window_bounds = array<i64: 16, 128>}, {pipeline_mode = #tpu.pipeline_mode<synchronous>, transform_indices = @transform_1, window_bounds = array<i64: 128, 128>}, {pipeline_mode = #tpu.pipeline_mode<synchronous>, transform_indices = @transform_2, window_bounds = array<i64: 1, 128>}, {pipeline_mode = #tpu.pipeline_mode<synchronous>, transform_indices = @transform_3, window_bounds = array<i64: 1, 128>}, {transform_indices = @transform_4, window_bounds = array<i64: 16, 128>}]} {
    %c0 = arith.constant 0 : index
    %c0_0 = arith.constant 0 : index
    %0 = vector.load %arg1[%c0, %c0_0] : memref<16x128xf32, #tpu.memory_space<vmem>>, vector<16x128xf32>
    %c0_1 = arith.constant 0 : index
    %c0_2 = arith.constant 0 : index
    %1 = vector.load %arg2[%c0_1, %c0_2] : memref<128x128xf32, #tpu.memory_space<vmem>>, vector<128x128xf32>
    %cst = arith.constant dense<0.000000e+00> : vector<16x128xf32>
    %2 = tpu.matmul %0, %1, %cst {dimension_numbers = #tpu.dot_dimension_numbers<[1], [0], [0], [1], [0, 0, 1, 1], [], []>} : vector<16x128xf32>, vector<128x128xf32>, vector<16x128xf32> -> vector<16x128xf32>
    %c0_3 = arith.constant 0 : index
    %c0_4 = arith.constant 0 : index
    %3 = vector.load %arg3[%c0_3, %c0_4] : memref<1x128xf32, #tpu.memory_space<vmem>>, vector<1x128xf32>
    %c0_5 = arith.constant 0 : index
    %c0_6 = arith.constant 0 : index
    %4 = vector.load %arg4[%c0_5, %c0_6] : memref<1x128xf32, #tpu.memory_space<vmem>>, vector<1x128xf32>
    %cst_7 = arith.constant dense<0.000000e+00> : vector<16xf32>
    %5 = vector.multi_reduction <add>, %2, %cst_7 [1] : vector<16x128xf32> to vector<16xf32>
    %6 = vector.shape_cast %5 : vector<16xf32> to vector<16x1xf32>
    %cst_8 = arith.constant 7.812500e-03 : f32
    %7 = vector.broadcast %cst_8 : f32 to vector<16x1xf32>
    %8 = arith.mulf %6, %7 : vector<16x1xf32>
    %9 = vector.broadcast %8 : vector<16x1xf32> to vector<16x128xf32>
    %10 = arith.subf %2, %9 : vector<16x128xf32>
    %11 = arith.mulf %10, %10 : vector<16x128xf32>
    %cst_9 = arith.constant dense<0.000000e+00> : vector<16xf32>
    %12 = vector.multi_reduction <add>, %11, %cst_9 [1] : vector<16x128xf32> to vector<16xf32>
    %13 = vector.shape_cast %12 : vector<16xf32> to vector<16x1xf32>
    %cst_10 = arith.constant 7.812500e-03 : f32
    %14 = vector.broadcast %cst_10 : f32 to vector<16x1xf32>
    %15 = arith.mulf %13, %14 : vector<16x1xf32>
    %cst_11 = arith.constant 0.000000e+00 : f32
    %16 = vector.broadcast %cst_11 : f32 to vector<16x1xf32>
    %17 = arith.maximumf %15, %16 : vector<16x1xf32>
    %cst_12 = arith.constant 9.99999974E-6 : f32
    %18 = vector.broadcast %cst_12 : f32 to vector<16x1xf32>
    %19 = arith.addf %17, %18 : vector<16x1xf32>
    %20 = math.rsqrt %19 : vector<16x1xf32>
    %21 = vector.broadcast %20 : vector<16x1xf32> to vector<16x128xf32>
    %22 = arith.mulf %10, %21 : vector<16x128xf32>
    %23 = vector.broadcast %3 : vector<1x128xf32> to vector<16x128xf32>
    %24 = arith.mulf %22, %23 : vector<16x128xf32>
    %25 = vector.broadcast %4 : vector<1x128xf32> to vector<16x128xf32>
    %26 = arith.addf %24, %25 : vector<16x128xf32>
    %c0_13 = arith.constant 0 : index
    %c0_14 = arith.constant 0 : index
    %27 = vector.load %arg5[%c0_13, %c0_14] : memref<16x128xf32, #tpu.memory_space<vmem>>, vector<16x128xf32>
    tpu.vector_store %arg5[%c0_13, %c0_14], %26 {strides = array<i32>} : memref<16x128xf32, #tpu.memory_space<vmem>>, vector<16x128xf32>,
    return
  }
  func.func @transform_0(%arg0: i32) -> (i32, i32) {
    %c0_i32 = arith.constant 0 : i32
    %c0_i32_0 = arith.constant 0 : i32
    return %arg0, %c0_i32 : i32, i32
  }
  func.func @transform_1(%arg0: i32) -> (i32, i32) {
    %c0_i32 = arith.constant 0 : i32
    %c0_i32_0 = arith.constant 0 : i32
    %c0_i32_1 = arith.constant 0 : i32
    return %c0_i32, %c0_i32_0 : i32, i32
  }
  func.func @transform_2(%arg0: i32) -> (i32, i32) {
    %c0_i32 = arith.constant 0 : i32
    %c0_i32_0 = arith.constant 0 : i32
    %c0_i32_1 = arith.constant 0 : i32
    return %c0_i32, %c0_i32_0 : i32, i32
  }
  func.func @transform_3(%arg0: i32) -> (i32, i32) {
    %c0_i32 = arith.constant 0 : i32
    %c0_i32_0 = arith.constant 0 : i32
    %c0_i32_1 = arith.constant 0 : i32
    return %c0_i32, %c0_i32_0 : i32, i32
  }
  func.func @transform_4(%arg0: i32) -> (i32, i32) {
    %c0_i32 = arith.constant 0 : i32
    %c0_i32_0 = arith.constant 0 : i32
    return %arg0, %c0_i32 : i32, i32
  }
}

</mosaic_0001>

<bundles_post_ra>
// kernel: tpu_custom_call.1
= control target key start
LH: loop header
LB: loop body
LE: loop exit
PB: predicated region body
PF: predicated region fallthrough
CT: control target
= control target key end

     0   :  { %9 = vsyncpa [#allocation3], 0  ;;  %s450_s0 = inlined_call_operand.hbm [shape: f32[16,128], index: 0, kind: input, shape index: {}]   ;;  %s451_s1 = inlined_call_operand.hbm [shape: f32[128,128], index: 1, kind: input, shape index: {}]   ;;  %s452_s2 = inlined_call_operand.vmem [shape: f32[1,128], index: 2, kind: input, shape index: {}]   ;;  %s453_s3 = inlined_call_operand.vmem [shape: f32[1,128], index: 3, kind: input, shape index: {}]   ;;  %s454_s4 = inlined_call_operand.hbm [shape: f32[16,128], index: 4, kind: output, shape index: {}]  }
   0x1   :  { %10 = vsyncpa [#allocation6], 0 }
   0x2   :  { %11 = vsyncpa [#allocation4], 0  ;;  %s369_s15 = smov [#allocation2]   ;;  %s297_s19 = scalar_lea.hbm %s450_s0, 256 }
   0x3   :  { %s17_s16 = sshll.u32 %s369_s15, 4  ;;  %p298_p0 = scmp.ne.s32.totalorder %s450_s0, %s297_s19  ;;  %s18_s16 = int_to_ptr.vmem [resolvable:$true] %s17_s16 }
   0x4   :  { %p301_p1 = scmp.lt.u32.totalorder %s297_s19, %s450_s0 }
   0x6   :  { %p303_p2 = pnand %p301_p1, %p298_p0 }
   0x8   :  { %306 = shalt.err (!%p303_p2)
}
   0x9   :  { %s307_s24 = scalar_lea.vmem %s18_s16, 256  ;;  %p312_p4 = scmp.lt.s32.totalorder %s18_s16, %s18_s16 }
   0xa   :  { %p308_p3 = scmp.ne.s32.totalorder %s18_s16, %s307_s24  ;;  %p313_p5 = scmp.lt.s32.totalorder %s307_s24, %s307_s24 }
   0xc   :  { %p314_p6 = por %p313_p5, %p312_p4 }
   0xe   :  { %p315_p7 = pnand %p314_p6, %p308_p3 }
  0x10   :  { %318 = shalt.err (!%p315_p7)
}
  0x11   :  { %s370_s25 = smov 128   ;;  %s371_s26 = smov 8  }
  0x12   :  { %23 = dma.hbm_to_vmem [thread:$0]  %s450_s0, 256, %s18_s16, [#allocation3], %s370_s25, %s370_s25, %s371_s26  }
  0x13   :  { %s372_s29 = smov [#allocation5]   ;;  %s319_s7 = scalar_lea.hbm %s451_s1, 2048 }
  0x14   :  { %s29_s30 = sshll.u32 %s372_s29, 4  ;;  %p320_p8 = scmp.ne.s32.totalorder %s451_s1, %s319_s7  ;;  %s30_s30 = int_to_ptr.vmem [resolvable:$true] %s29_s30 }
  0x15   :  { %p323_p9 = scmp.lt.u32.totalorder %s319_s7, %s451_s1 }
  0x17   :  { %p325_p10 = pnand %p323_p9, %p320_p8 }
  0x19   :  { %328 = shalt.err (!%p325_p10)
}
  0x1a   :  { %s329_s12 = scalar_lea.vmem %s30_s30, 2048  ;;  %p334_p12 = scmp.lt.s32.totalorder %s30_s30, %s30_s30 }
  0x1b   :  { %p330_p11 = scmp.ne.s32.totalorder %s30_s30, %s329_s12  ;;  %p335_p13 = scmp.lt.s32.totalorder %s329_s12, %s329_s12 }
  0x1d   :  { %p336_p0 = por %p335_p13, %p334_p12 }
  0x1f   :  { %p337_p1 = pnand %p336_p0, %p330_p11 }
  0x21   :  { %340 = shalt.err (!%p337_p1)
}
  0x22   :  { %35 = dma.hbm_to_vmem [thread:$0]  %s451_s1, 2048, %s30_s30, [#allocation6], %s370_s25, %s370_s25, %s371_s26  }
  0x23   :  { %363 = dma.done.wait [#allocation3], 256  }
  0x24   :  { %364 = vsyncadd [#allocation3], 4294967040 }
  0x25   :  { %365 = dma.done.wait [#allocation6], 2048  }
  0x26   :  { %366 = vsyncadd [#allocation6], 4294965248  ;;  %v48_v0 = vld [vmem:[#allocation5] sm:$0xff]  ;;  %v49_v1 = vld [vmem:[#allocation5 + $0x8] sm:$0xff]  ;;  %s373_s17 = smov [#allocation7]  }
  0x27   :  { %v50_v2 = vld [vmem:[#allocation5 + $0x10] sm:$0xff]  ;;  %v256_v3 = vpack.c.bf16 %v49_v1, %v48_v0  ;;  %v51_v4 = vld [vmem:[#allocation5 + $0x18] sm:$0xff]  ;;  %v52_v6 = vld [vmem:[#allocation5 + $0x20] sm:$0xff]  ;;  %s188_s18 = sshll.u32 %s373_s17, 4  ;;  %s189_s18 = int_to_ptr.vmem [resolvable:$true] %s188_s18 }
  0x28   :  { %v260_v5 = vpack.c.bf16 %v51_v4, %v50_v2  ;;  %v53_v7 = vld [vmem:[#allocation5 + $0x28] sm:$0xff]  ;;  %v46_v9 = vld [vmem:[#allocation2] sm:$0xff]  ;;  %v55_v11 = vld [vmem:[#allocation5 + $0x38] sm:$0xff]  ;;  %s341_s19 = scalar_lea.vmem %s189_s18, 256  ;;  %p346_p3 = scmp.lt.s32.totalorder %s189_s18, %s189_s18 }
  0x29   :  { %257 = vmatprep.subr.bf16.mxu0 %v256_v3  ;;  %v264_v8 = vpack.c.bf16 %v53_v7, %v52_v6  ;;  %v54_v10 = vld [vmem:[#allocation5 + $0x30] sm:$0xff]  ;;  %253 = vmatprep.mubr.f32.mxu0 %v46_v9  ;;  %v56_v13 = vld [vmem:[#allocation5 + $0x40] sm:$0xff]  ;;  %v57_v14 = vld [vmem:[#allocation5 + $0x48] sm:$0xff]  ;;  %p342_p2 = scmp.ne.s32.totalorder %s189_s18, %s341_s19  ;;  %p347_p4 = scmp.lt.s32.totalorder %s341_s19, %s341_s19 }
  0x2a   :  { %259 = vmatpush3.bf16.msra.mxu0 %v256_v3  ;;  %v268_v12 = vpack.c.bf16 %v55_v11, %v54_v10  ;;  %v272_v15 = vpack.c.bf16 %v57_v14, %v56_v13  ;;  %v58_v16 = vld [vmem:[#allocation5 + $0x50] sm:$0xff]  ;;  %v59_v17 = vld [vmem:[#allocation5 + $0x58] sm:$0xff]  ;;  %v60_v19 = vld [vmem:[#allocation5 + $0x60] sm:$0xff] }
  0x2b   :  { %261 = vmatprep.subr.bf16.mxu0 %v260_v5  ;;  %v276_v18 = vpack.c.bf16 %v59_v17, %v58_v16  ;;  %v61_v20 = vld [vmem:[#allocation5 + $0x68] sm:$0xff]  ;;  %v62_v22 = vld [vmem:[#allocation5 + $0x70] sm:$0xff]  ;;  %v63_v23 = vld [vmem:[#allocation5 + $0x78] sm:$0xff]  ;;  %p348_p5 = por %p347_p4, %p346_p3 }
  0x2c   :  { %v280_v21 = vpack.c.bf16 %v61_v20, %v60_v19  ;;  %v284_v24 = vpack.c.bf16 %v63_v23, %v62_v22  ;;  %v47_v25 = vld [vmem:[#allocation2 + $0x8] sm:$0xff]  ;;  %v201_v45 = vld [vmem:[%s452_s2] ss:$0 sm:$0xff] }
  0x2d   :  { %v202_v47 = vld [vmem:[%s453_s3] ss:$0 sm:$0xff]  ;;  %p349_p6 = pnand %p348_p5, %p342_p2 }
  0x2e   :  { %263 = vmatpush3.bf16.msra.mxu0 %v260_v5 }
  0x2f   :  { %265 = vmatprep.subr.bf16.mxu0 %v264_v8 }
  0x32   :  { %267 = vmatpush3.bf16.msra.mxu0 %v264_v8 }
  0x33   :  { %269 = vmatprep.subr.bf16.mxu0 %v268_v12 }
  0x36   :  { %271 = vmatpush3.bf16.msra.mxu0 %v268_v12 }
  0x37   :  { %273 = vmatprep.subr.bf16.mxu0 %v272_v15 }
  0x3a   :  { %275 = vmatpush3.bf16.msra.mxu0 %v272_v15 }
  0x3b   :  { %277 = vmatprep.subr.bf16.mxu0 %v276_v18 }
  0x3e   :  { %279 = vmatpush3.bf16.msra.mxu0 %v276_v18 }
  0x3f   :  { %281 = vmatprep.subr.bf16.mxu0 %v280_v21 }
  0x42   :  { %283 = vmatpush3.bf16.msra.mxu0 %v280_v21 }
  0x43   :  { %285 = vmatprep.subr.bf16.mxu0 %v284_v24 }
  0x46   :  { %287 = vmatpush3.bf16.msra.mxu0 %v284_v24 }
  0x49   :  { %254 = vmatmul.mubr.f32.vlgmr.msra.gmra.mrb[0].mxu0 %v47_v25 }
 0x11c   :  { %v255_v26 = vpop.f32.mrb[0].mxu0 }
 0x11d   :  { %v130_v27 = vpop.f32.mrb[1].mxu0 }
 0x11e   :  { %141 = vadd.xlane.f32.xlu0 %v130_v27 }
 0x122   :  { %143 = vadd.xlane.f32.xlu0 %v255_v26 }
 0x1ab   :  { %v142_v28 = vpop.xlane.xlu0 %141 }
 0x1ac   :  { %v145_v29 = vmul.f32 0.0078125, %v142_v28 }
 0x1ae   :  { %v147_v30 = vsub.f32 %v130_v27, %v145_v29 }
 0x1af   :  { %v144_v31 = vpop.xlane.xlu0 %143 }
 0x1b0   :  { %v146_v32 = vmul.f32 0.0078125, %v144_v31  ;;  %v149_v33 = vmul.f32 %v147_v30, %v147_v30 }
 0x1b2   :  { %v148_v34 = vsub.f32 %v255_v26, %v146_v32  ;;  %151 = vadd.xlane.f32.xlu1 %v149_v33 }
 0x1b4   :  { %v150_v35 = vmul.f32 %v148_v34, %v148_v34 }
 0x1b6   :  { %153 = vadd.xlane.f32.xlu1 %v150_v35 }
 0x23f   :  { %v152_v36 = vpop.xlane.xlu1 %151 }
 0x240   :  { %v155_v37 = vmul.f32 0.0078125, %v152_v36 }
 0x242   :  { %v157_v38 = vmax.f32 %v155_v37, 0.0 }
 0x243   :  { %v154_v39 = vpop.xlane.xlu1 %153 }
 0x244   :  { %v159_v40 = vadd.f32 1e-05, %v157_v38  ;;  %v156_v41 = vmul.f32 0.0078125, %v154_v39 }
 0x246   :  { %293 = vrsqrt.f32 %v159_v40  ;;  %v158_v42 = vmax.f32 %v156_v41, 0.0 }
 0x248   :  { %v160_v43 = vadd.f32 1e-05, %v158_v42 }
 0x24a   :  { %295 = vrsqrt.f32 %v160_v43 }
 0x250   :  { %v294_v44 = vpop.eup %293 }
 0x251   :  { %v163_v46 = vmul.f32 %v294_v44, %v147_v30 }
 0x253   :  { %v171_v48 = vmul.f32 %v201_v45, %v163_v46 }
 0x254   :  { %v296_v49 = vpop.eup %295 }
 0x255   :  { %v164_v50 = vmul.f32 %v296_v49, %v148_v34  ;;  %v179_v51 = vadd.f32 %v202_v47, %v171_v48 }
 0x257   :  { %v172_v52 = vmul.f32 %v201_v45, %v164_v50  ;;  %181 = vst [vmem:[#allocation7] sm:$0xff] %v179_v51 }
 0x259   :  { %v180_v53 = vadd.f32 %v202_v47, %v172_v52 }
 0x25b   :  { %182 = vst [vmem:[#allocation7 + $0x8] sm:$0xff] %v180_v53 }
 0x25c   :  { %352 = shalt.err (!%p349_p6)
}
 0x25d   :  { %s353_s20 = scalar_lea.hbm %s454_s4, 256 }
 0x25e   :  { %p354_p7 = scmp.ne.s32.totalorder %s454_s4, %s353_s20  ;;  %p357_p8 = scmp.lt.u32.totalorder %s353_s20, %s454_s4 }
 0x260   :  { %p359_p9 = pnand %p357_p8, %p354_p7 }
 0x262   :  { %362 = shalt.err (!%p359_p9)
}
 0x263   :  { %194 = dma.vmem_to_hbm [thread:$0]  %s189_s18, 256, %s454_s4, [#allocation4], %s370_s25, %s370_s25, %s371_s26  }
 0x264   :  { %367 = dma.done.wait [#allocation4], 256  }
 0x265   :  { %368 = vsyncadd [#allocation4], 4294967040 }
 0x266   :  { %198 = vsyncpa [#allocation3], 1 }
 0x267   :  { %199 = vsyncpa [#allocation6], 1 }
 0x268   :  { %200 = vsyncpa [#allocation4], 1 }

// kernel: tpu_custom_call.1
= control target key start
LH: loop header
LB: loop body
LE: loop exit
PB: predicated region body
PF: predicated region fallthrough
CT: control target
= control target key end

     0   :  { %9 = vsyncpa [#allocation3], 0  ;;  %s450_s0 = inlined_call_operand.hbm [shape: f32[16,128], index: 0, kind: input, shape index: {}]   ;;  %s451_s1 = inlined_call_operand.hbm [shape: f32[128,128], index: 1, kind: input, shape index: {}]   ;;  %s452_s2 = inlined_call_operand.vmem [shape: f32[1,128], index: 2, kind: input, shape index: {}]   ;;  %s453_s3 = inlined_call_operand.vmem [shape: f32[1,128], index: 3, kind: input, shape index: {}]   ;;  %s454_s4 = inlined_call_operand.hbm [shape: f32[16,128], index: 4, kind: output, shape index: {}]  }
   0x1   :  { %10 = vsyncpa [#allocation6], 0 }
   0x2   :  { %11 = vsyncpa [#allocation4], 0  ;;  %s369_s15 = smov [#allocation2]   ;;  %s297_s19 = scalar_lea.hbm %s450_s0, 256 }
   0x3   :  { %s17_s16 = sshll.u32 %s369_s15, 4  ;;  %p298_p0 = scmp.ne.s32.totalorder %s450_s0, %s297_s19  ;;  %s18_s16 = int_to_ptr.vmem [resolvable:$true] %s17_s16 }
   0x4   :  { %p301_p1 = scmp.lt.u32.totalorder %s297_s19, %s450_s0 }
   0x6   :  { %p303_p2 = pnand %p301_p1, %p298_p0 }
   0x8   :  { %306 = shalt.err (!%p303_p2)
}
   0x9   :  { %s307_s24 = scalar_lea.vmem %s18_s16, 256  ;;  %p312_p4 = scmp.lt.s32.totalorder %s18_s16, %s18_s16 }
   0xa   :  { %p308_p3 = scmp.ne.s32.totalorder %s18_s16, %s307_s24  ;;  %p313_p5 = scmp.lt.s32.totalorder %s307_s24, %s307_s24 }
   0xc   :  { %p314_p6 = por %p313_p5, %p312_p4 }
   0xe   :  { %p315_p7 = pnand %p314_p6, %p308_p3 }
  0x10   :  { %318 = shalt.err (!%p315_p7)
}
  0x11   :  { %s370_s25 = smov 128   ;;  %s371_s26 = smov 8  }
  0x12   :  { %23 = dma.hbm_to_vmem [thread:$0]  %s450_s0, 256, %s18_s16, [#allocation3], %s370_s25, %s370_s25, %s371_s26  }
  0x13   :  { %s372_s29 = smov [#allocation5]   ;;  %s319_s7 = scalar_lea.hbm %s451_s1, 2048 }
  0x14   :  { %s29_s30 = sshll.u32 %s372_s29, 4  ;;  %p320_p8 = scmp.ne.s32.totalorder %s451_s1, %s319_s7  ;;  %s30_s30 = int_to_ptr.vmem [resolvable:$true] %s29_s30 }
  0x15   :  { %p323_p9 = scmp.lt.u32.totalorder %s319_s7, %s451_s1 }
  0x17   :  { %p325_p10 = pnand %p323_p9, %p320_p8 }
  0x19   :  { %328 = shalt.err (!%p325_p10)
}
  0x1a   :  { %s329_s12 = scalar_lea.vmem %s30_s30, 2048  ;;  %p334_p12 = scmp.lt.s32.totalorder %s30_s30, %s30_s30 }
  0x1b   :  { %p330_p11 = scmp.ne.s32.totalorder %s30_s30, %s329_s12  ;;  %p335_p13 = scmp.lt.s32.totalorder %s329_s12, %s329_s12 }
  0x1d   :  { %p336_p0 = por %p335_p13, %p334_p12 }
  0x1f   :  { %p337_p1 = pnand %p336_p0, %p330_p11 }
  0x21   :  { %340 = shalt.err (!%p337_p1)
}
  0x22   :  { %35 = dma.hbm_to_vmem [thread:$0]  %s451_s1, 2048, %s30_s30, [#allocation6], %s370_s25, %s370_s25, %s371_s26  }
  0x23   :  { %363 = dma.done.wait [#allocation3], 256  }
  0x24   :  { %364 = vsyncadd [#allocation3], 4294967040 }
  0x25   :  { %365 = dma.done.wait [#allocation6], 2048  }
  0x26   :  { %366 = vsyncadd [#allocation6], 4294965248  ;;  %v48_v0 = vld [vmem:[#allocation5] sm:$0xff]  ;;  %v49_v1 = vld [vmem:[#allocation5 + $0x8] sm:$0xff]  ;;  %s373_s17 = smov [#allocation7]  }
  0x27   :  { %v50_v2 = vld [vmem:[#allocation5 + $0x10] sm:$0xff]  ;;  %v256_v3 = vpack.c.bf16 %v49_v1, %v48_v0  ;;  %v51_v4 = vld [vmem:[#allocation5 + $0x18] sm:$0xff]  ;;  %v52_v6 = vld [vmem:[#allocation5 + $0x20] sm:$0xff]  ;;  %s188_s18 = sshll.u32 %s373_s17, 4  ;;  %s189_s18 = int_to_ptr.vmem [resolvable:$true] %s188_s18 }
  0x28   :  { %v260_v5 = vpack.c.bf16 %v51_v4, %v50_v2  ;;  %v53_v7 = vld [vmem:[#allocation5 + $0x28] sm:$0xff]  ;;  %v46_v9 = vld [vmem:[#allocation2] sm:$0xff]  ;;  %v55_v11 = vld [vmem:[#allocation5 + $0x38] sm:$0xff]  ;;  %s341_s19 = scalar_lea.vmem %s189_s18, 256  ;;  %p346_p3 = scmp.lt.s32.totalorder %s189_s18, %s189_s18 }
  0x29   :  { %257 = vmatprep.subr.bf16.mxu0 %v256_v3  ;;  %v264_v8 = vpack.c.bf16 %v53_v7, %v52_v6  ;;  %v54_v10 = vld [vmem:[#allocation5 + $0x30] sm:$0xff]  ;;  %253 = vmatprep.mubr.f32.mxu0 %v46_v9  ;;  %v56_v13 = vld [vmem:[#allocation5 + $0x40] sm:$0xff]  ;;  %v57_v14 = vld [vmem:[#allocation5 + $0x48] sm:$0xff]  ;;  %p342_p2 = scmp.ne.s32.totalorder %s189_s18, %s341_s19  ;;  %p347_p4 = scmp.lt.s32.totalorder %s341_s19, %s341_s19 }
  0x2a   :  { %259 = vmatpush3.bf16.msra.mxu0 %v256_v3  ;;  %v268_v12 = vpack.c.bf16 %v55_v11, %v54_v10  ;;  %v272_v15 = vpack.c.bf16 %v57_v14, %v56_v13  ;;  %v58_v16 = vld [vmem:[#allocation5 + $0x50] sm:$0xff]  ;;  %v59_v17 = vld [vmem:[#allocation5 + $0x58] sm:$0xff]  ;;  %v60_v19 = vld [vmem:[#allocation5 + $0x60] sm:$0xff] }
  0x2b   :  { %261 = vmatprep.subr.bf16.mxu0 %v260_v5  ;;  %v276_v18 = vpack.c.bf16 %v59_v17, %v58_v16  ;;  %v61_v20 = vld [vmem:[#allocation5 + $0x68] sm:$0xff]  ;;  %v62_v22 = vld [vmem:[#allocation5 + $0x70] sm:$0xff]  ;;  %v63_v23 = vld [vmem:[#allocation5 + $0x78] sm:$0xff]  ;;  %p348_p5 = por %p347_p4, %p346_p3 }
  0x2c   :  { %v280_v21 = vpack.c.bf16 %v61_v20, %v60_v19  ;;  %v284_v24 = vpack.c.bf16 %v63_v23, %v62_v22  ;;  %v47_v25 = vld [vmem:[#allocation2 + $0x8] sm:$0xff]  ;;  %v201_v45 = vld [vmem:[%s452_s2] ss:$0 sm:$0xff] }
  0x2d   :  { %v202_v47 = vld [vmem:[%s453_s3] ss:$0 sm:$0xff]  ;;  %p349_p6 = pnand %p348_p5, %p342_p2 }
  0x2e   :  { %263 = vmatpush3.bf16.msra.mxu0 %v260_v5 }
  0x2f   :  { %265 = vmatprep.subr.bf16.mxu0 %v264_v8 }
  0x32   :  { %267 = vmatpush3.bf16.msra.mxu0 %v264_v8 }
  0x33   :  { %269 = vmatprep.subr.bf16.mxu0 %v268_v12 }
  0x36   :  { %271 = vmatpush3.bf16.msra.mxu0 %v268_v12 }
  0x37   :  { %273 = vmatprep.subr.bf16.mxu0 %v272_v15 }
  0x3a   :  { %275 = vmatpush3.bf16.msra.mxu0 %v272_v15 }
  0x3b   :  { %277 = vmatprep.subr.bf16.mxu0 %v276_v18 }
  0x3e   :  { %279 = vmatpush3.bf16.msra.mxu0 %v276_v18 }
  0x3f   :  { %281 = vmatprep.subr.bf16.mxu0 %v280_v21 }
  0x42   :  { %283 = vmatpush3.bf16.msra.mxu0 %v280_v21 }
  0x43   :  { %285 = vmatprep.subr.bf16.mxu0 %v284_v24 }
  0x46   :  { %287 = vmatpush3.bf16.msra.mxu0 %v284_v24 }
  0x49   :  { %254 = vmatmul.mubr.f32.vlgmr.msra.gmra.mrb[0].mxu0 %v47_v25 }
 0x11c   :  { %v255_v26 = vpop.f32.mrb[0].mxu0 }
 0x11d   :  { %v130_v27 = vpop.f32.mrb[1].mxu0 }
 0x11e   :  { %141 = vadd.xlane.f32.xlu0 %v130_v27 }
 0x122   :  { %143 = vadd.xlane.f32.xlu0 %v255_v26 }
 0x1ab   :  { %v142_v28 = vpop.xlane.xlu0 %141 }
 0x1ac   :  { %v145_v29 = vmul.f32 0.0078125, %v142_v28 }
 0x1ae   :  { %v147_v30 = vsub.f32 %v130_v27, %v145_v29 }
 0x1af   :  { %v144_v31 = vpop.xlane.xlu0 %143 }
 0x1b0   :  { %v146_v32 = vmul.f32 0.0078125, %v144_v31  ;;  %v149_v33 = vmul.f32 %v147_v30, %v147_v30 }
 0x1b2   :  { %v148_v34 = vsub.f32 %v255_v26, %v146_v32  ;;  %151 = vadd.xlane.f32.xlu1 %v149_v33 }
 0x1b4   :  { %v150_v35 = vmul.f32 %v148_v34, %v148_v34 }
 0x1b6   :  { %153 = vadd.xlane.f32.xlu1 %v150_v35 }
 0x23f   :  { %v152_v36 = vpop.xlane.xlu1 %151 }
 0x240   :  { %v155_v37 = vmul.f32 0.0078125, %v152_v36 }
 0x242   :  { %v157_v38 = vmax.f32 %v155_v37, 0.0 }
 0x243   :  { %v154_v39 = vpop.xlane.xlu1 %153 }
 0x244   :  { %v159_v40 = vadd.f32 1e-05, %v157_v38  ;;  %v156_v41 = vmul.f32 0.0078125, %v154_v39 }
 0x246   :  { %293 = vrsqrt.f32 %v159_v40  ;;  %v158_v42 = vmax.f32 %v156_v41, 0.0 }
 0x248   :  { %v160_v43 = vadd.f32 1e-05, %v158_v42 }
 0x24a   :  { %295 = vrsqrt.f32 %v160_v43 }
 0x250   :  { %v294_v44 = vpop.eup %293 }
 0x251   :  { %v163_v46 = vmul.f32 %v294_v44, %v147_v30 }
 0x253   :  { %v171_v48 = vmul.f32 %v201_v45, %v163_v46 }
 0x254   :  { %v296_v49 = vpop.eup %295 }
 0x255   :  { %v164_v50 = vmul.f32 %v296_v49, %v148_v34  ;;  %v179_v51 = vadd.f32 %v202_v47, %v171_v48 }
 0x257   :  { %v172_v52 = vmul.f32 %v201_v45, %v164_v50  ;;  %181 = vst [vmem:[#allocation7] sm:$0xff] %v179_v51 }
 0x259   :  { %v180_v53 = vadd.f32 %v202_v47, %v172_v52 }
 0x25b   :  { %182 = vst [vmem:[#allocation7 + $0x8] sm:$0xff] %v180_v53 }
 0x25c   :  { %352 = shalt.err (!%p349_p6)
}
 0x25d   :  { %s353_s20 = scalar_lea.hbm %s454_s4, 256 }
 0x25e   :  { %p354_p7 = scmp.ne.s32.totalorder %s454_s4, %s353_s20  ;;  %p357_p8 = scmp.lt.u32.totalorder %s353_s20, %s454_s4 }
 0x260   :  { %p359_p9 = pnand %p357_p8, %p354_p7 }
 0x262   :  { %362 = shalt.err (!%p359_p9)
}
 0x263   :  { %194 = dma.vmem_to_hbm [thread:$0]  %s189_s18, 256, %s454_s4, [#allocation4], %s370_s25, %s370_s25, %s371_s26  }
 0x264   :  { %367 = dma.done.wait [#allocation4], 256  }
 0x265   :  { %368 = vsyncadd [#allocation4], 4294967040 }
 0x266   :  { %198 = vsyncpa [#allocation3], 1 }
 0x267   :  { %199 = vsyncpa [#allocation6], 1 }
 0x268   :  { %200 = vsyncpa [#allocation4], 1 }

</bundles_post_ra>
